<compile_context>
chip_gen: v5e
topology: v5e:2x2
jax: 0.10.0
libtpu: 0.0.40
codegen_flags: <defaults>
</compile_context>

<pallas_src>
import jax
import jax.numpy as jnp
from jax.experimental import pallas as pl
from jax.experimental.pallas import tpu as pltpu


# --------------------------------------------------------------------------
# Fused kernel: recompute per-batch FiLM scale/shift from resident weights,
# then do the HBM-bandwidth-bound broadcast FMA on the x tile.
# --------------------------------------------------------------------------
def tse_fused_kernel(emb_ref, wcat_ref, bcat_ref, x_ref, o_ref):
    # emb_ref : (1, D)       embedding row for this batch element (f32)
    # wcat_ref: (2*CF, D)    [scale; shift] Conv1d weights, VMEM-resident
    # bcat_ref: (2*CF, 1)    [scale; shift] Conv1d biases,  VMEM-resident
    # x_ref   : (CF, tT)     input tile
    # o_ref   : (CF, tT)     output tile
    cf = o_ref.shape[0]
    # Tiny projection: (2CF, D) * (1, D) summed over D -> (2CF, 1).  D is a
    # handful of lanes, so VPU mul + XLU lane-reduce; negligible vs the DMA.
    proj = (
        jnp.sum(wcat_ref[...] * emb_ref[...], axis=1, keepdims=True)
        + bcat_ref[...]
    )
    w = proj[:cf, :]                       # (CF, 1) scale, broadcasts over T
    b = proj[cf:, :]                       # (CF, 1) shift
    o_ref[...] = (x_ref[...].astype(jnp.float32) * w + b).astype(o_ref.dtype)


# --------------------------------------------------------------------------
# Tiling / budget helpers
# --------------------------------------------------------------------------
def _device_budgets():
    """Return (per-block byte budget, vmem_limit_bytes) for the current TPU."""
    kind = ""
    try:
        kind = jax.devices()[0].device_kind.lower()
    except Exception:
        pass
    if "v7" in kind:
        # 64 MiB physical VMEM, 3.2 TB/s HBM: bigger blocks amortize the
        # ~0.35 us/step overhead, but keep 4x double-buffered blocks <= ~24 MiB.
        return 5 * (1 << 20), 28 * (1 << 20)
    if "v6" in kind:
        # 128 MiB physical VMEM, 1.4 TB/s HBM: plenty of headroom.
        return 6 * (1 << 20), 64 * (1 << 20)
    if "v5 lite" in kind or "v5e" in kind:
        # 16 MiB scoped-VMEM default; 2.5 MiB blocks keep x+out double-buffered
        # ~10 MiB, and we raise the limit modestly for safety margin.
        return (5 * (1 << 20)) // 2, 24 * (1 << 20)
    # Unknown generation: conservative.
    return 2 * (1 << 20), 32 * (1 << 20)


def _pick_t_tile(T, CF, itemsize, budget_bytes):
    """Largest lane-dense T tile under the byte budget; T need not divide."""
    if T <= 128 or CF * T * itemsize <= budget_bytes:
        # Whole-T block (also the only legal lane layout when T < 128).
        return T
    lanes = (budget_bytes // (CF * itemsize)) // 128 * 128
    lanes = max(128, lanes)
    # Never request a block wider than T rounded down to 128; the ragged tail
    # is handled by grid=cdiv(T, tT) + block masking.
    return min(lanes, (T // 128) * 128)


# --------------------------------------------------------------------------
# Wrapper
# --------------------------------------------------------------------------
def tse_layer(x, embedding, w_weight, w_bias, b_weight, b_bias,
              *, block_budget_bytes=None):
    """
    x:         (B, D, F, T)  (D must equal C, as the torch broadcast requires)
    embedding: (B, D, 1)
    w_weight:  (C*F, D, 1)   Conv1d weight (scale branch)
    w_bias:    (C*F,)
    b_weight:  (C*F, D, 1)   Conv1d weight (shift branch)
    b_bias:    (C*F,)
    returns:   (B, C, F, T)
    """
    B, D, F, T = x.shape
    CF = w_weight.shape[0]
    C = CF // F
    assert C * F == CF and C == D, "TSELayer broadcast requires C == D"

    budget, vmem_limit = _device_budgets()
    if block_budget_bytes is not None:
        budget = block_budget_bytes

    # ---- glue: flatten (C, F) -> CF so the sublane axis is densely packed ----
    x2 = x.reshape(B, CF, T)                                    # free reshape
    emb = embedding[:, :, 0].reshape(B, 1, D).astype(jnp.float32)
    wcat = jnp.concatenate(
        [w_weight[:, :, 0], b_weight[:, :, 0]], axis=0).astype(jnp.float32)   # (2CF, D)
    bcat = jnp.concatenate(
        [w_bias, b_bias], axis=0).reshape(2 * CF, 1).astype(jnp.float32)      # (2CF, 1)

    itemsize = jnp.dtype(x.dtype).itemsize
    tT = _pick_t_tile(T, CF, itemsize, budget)
    nT = pl.cdiv(T, tT)

    elems = B * CF * T
    cost = pl.CostEstimate(
        flops=2 * elems + B * nT * (4 * CF * D),                # FMA + per-tile proj
        transcendentals=0,
        bytes_accessed=2 * elems * itemsize + (2 * CF * D + 2 * CF + B * D) * 4,
    )

    out = pl.pallas_call(
        tse_fused_kernel,
        out_shape=jax.ShapeDtypeStruct((B, CF, T), x.dtype),
        grid=(B, nT),
        in_specs=[
            pl.BlockSpec((None, 1, D), lambda bi, ti: (bi, 0, 0)),     # embedding row
            pl.BlockSpec((2 * CF, D), lambda bi, ti: (0, 0)),          # fused weights
            pl.BlockSpec((2 * CF, 1), lambda bi, ti: (0, 0)),          # fused biases
            pl.BlockSpec((None, CF, tT), lambda bi, ti: (bi, 0, ti)),  # x tile
        ],
        out_specs=pl.BlockSpec((None, CF, tT), lambda bi, ti: (bi, 0, ti)),
        compiler_params=pltpu.CompilerParams(
            dimension_semantics=("parallel", "parallel"),
            vmem_limit_bytes=vmem_limit),
        cost_estimate=cost,
    )(emb, wcat, bcat, x2)

    # TODO(synk): if the model tolerates bf16 activations, carry x/out in bf16
    # (the kernel already upcasts to f32 internally) for ~2x HBM-bound speedup.
    return out.reshape(B, C, F, T)


def tse_layer_ref(x, embedding, w_weight, w_bias, b_weight, b_bias):
    """Pure-JAX reference mirroring the PyTorch forward exactly."""
    B, D, F, T = x.shape
    CF = w_weight.shape[0]
    C = CF // F
    e = embedding[:, :, 0]                                          # (B, D)
    w = (jnp.einsum("bd,od->bo", e, w_weight[:, :, 0]) + w_bias).reshape(B, C, F, 1)
    b = (jnp.einsum("bd,od->bo", e, b_weight[:, :, 0]) + b_bias).reshape(B, C, F, 1)
    return x * w + b


if __name__ == "__main__":
    B, D, C, nF, T = 2, 4, 4, 16, 16   # D == C as the torch broadcast implies

    key = jax.random.PRNGKey(0)
    kx, ke, kw1, kb1, kw2, kb2 = jax.random.split(key, 6)

    x = jax.random.normal(kx, (B, D, nF, T), dtype=jnp.float32)
    embedding = jax.random.normal(ke, (B, D, 1), dtype=jnp.float32)

    # Deterministic synthetic Conv1d params (shapes per nn.Conv1d(D, C*nF, 1)).
    w_weight = jax.random.normal(kw1, (C * nF, D, 1), dtype=jnp.float32) * 0.1
    w_bias = jax.random.normal(kb1, (C * nF,), dtype=jnp.float32) * 0.1
    b_weight = jax.random.normal(kw2, (C * nF, D, 1), dtype=jnp.float32) * 0.1
    b_bias = jax.random.normal(kb2, (C * nF,), dtype=jnp.float32) * 0.1

    out = jax.block_until_ready(
        tse_layer(x, embedding, w_weight, w_bias, b_weight, b_bias))
    ref = tse_layer_ref(x, embedding, w_weight, w_bias, b_weight, b_bias)
    assert out.shape == (B, C, nF, T)
    assert jnp.allclose(out, ref, atol=1e-5, rtol=1e-5), "mismatch vs reference"

    # Second check: exercise the ragged-T tiling path (T not a multiple of the
    # forced 128-lane tile) with a tiny block budget.
    T2 = 320
    x_big = jax.random.normal(kx, (B, D, nF, T2), dtype=jnp.float32)
    out2 = jax.block_until_ready(
        tse_layer(x_big, embedding, w_weight, w_bias, b_weight, b_bias,
                  block_budget_bytes=C * nF * 128 * 4))
    ref2 = tse_layer_ref(x_big, embedding, w_weight, w_bias, b_weight, b_bias)
    assert jnp.allclose(out2, ref2, atol=1e-5, rtol=1e-5), "mismatch (ragged T)"

    print("KERNEL_OK")
</pallas_src>

<mosaic_0001>
module attributes {stable_mosaic.version = 11 : i64} {
  func.func @tse_fused_kernel(%arg0: i32, %arg1: i32, %arg2: memref<1x1x4xf32, #tpu.memory_space<vmem>>, %arg3: memref<128x4xf32, #tpu.memory_space<vmem>>, %arg4: memref<128x1xf32, #tpu.memory_space<vmem>>, %arg5: memref<1x64x16xf32, #tpu.memory_space<vmem>>, %arg6: memref<1x64x16xf32, #tpu.memory_space<vmem>>) attributes {dimension_semantics = [#tpu.dimension_semantics<parallel>, #tpu.dimension_semantics<parallel>], iteration_bounds = array<i64: 2, 1>, scalar_prefetch = 0 : i64, scratch_operands = 0 : i64, tpu.core_type = #tpu.core_type<tc>, window_params = [{transform_indices = @transform_0, window_bounds = array<i64: 1, 1, 4>}, {pipeline_mode = #tpu.pipeline_mode<synchronous>, transform_indices = @transform_1, window_bounds = array<i64: 128, 4>}, {pipeline_mode = #tpu.pipeline_mode<synchronous>, transform_indices = @transform_2, window_bounds = array<i64: 128, 1>}, {transform_indices = @transform_3, window_bounds = array<i64: 1, 64, 16>}, {transform_indices = @transform_4, window_bounds = array<i64: 1, 64, 16>}]} {
    %c0 = arith.constant 0 : index
    %c0_0 = arith.constant 0 : index
    %0 = vector.load %arg3[%c0, %c0_0] : memref<128x4xf32, #tpu.memory_space<vmem>>, vector<128x4xf32>
    %c0_1 = arith.constant 0 : index
    %c0_2 = arith.constant 0 : index
    %c0_3 = arith.constant 0 : index
    %1 = vector.load %arg2[%c0_1, %c0_2, %c0_3] : memref<1x1x4xf32, #tpu.memory_space<vmem>>, vector<1x1x4xf32>
    %2 = vector.shape_cast %1 : vector<1x1x4xf32> to vector<1x4xf32>
    %3 = vector.broadcast %2 : vector<1x4xf32> to vector<128x4xf32>
    %4 = arith.mulf %0, %3 : vector<128x4xf32>
    %cst = arith.constant dense<0.000000e+00> : vector<128xf32>
    %5 = vector.multi_reduction <add>, %4, %cst [1] : vector<128x4xf32> to vector<128xf32>
    %6 = vector.shape_cast %5 : vector<128xf32> to vector<128x1xf32>
    %c0_4 = arith.constant 0 : index
    %c0_5 = arith.constant 0 : index
    %7 = vector.load %arg4[%c0_4, %c0_5] : memref<128x1xf32, #tpu.memory_space<vmem>>, vector<128x1xf32>
    %8 = arith.addf %6, %7 : vector<128x1xf32>
    %9 = vector.extract_strided_slice %8 {offsets = [0, 0], sizes = [64, 1], strides = [1, 1]} : vector<128x1xf32> to vector<64x1xf32>
    %10 = vector.extract_strided_slice %8 {offsets = [64, 0], sizes = [64, 1], strides = [1, 1]} : vector<128x1xf32> to vector<64x1xf32>
    %c0_6 = arith.constant 0 : index
    %c0_7 = arith.constant 0 : index
    %c0_8 = arith.constant 0 : index
    %11 = vector.load %arg5[%c0_6, %c0_7, %c0_8] : memref<1x64x16xf32, #tpu.memory_space<vmem>>, vector<1x64x16xf32>
    %12 = vector.shape_cast %11 : vector<1x64x16xf32> to vector<64x16xf32>
    %13 = vector.broadcast %9 : vector<64x1xf32> to vector<64x16xf32>
    %14 = arith.mulf %12, %13 : vector<64x16xf32>
    %15 = vector.broadcast %10 : vector<64x1xf32> to vector<64x16xf32>
    %16 = arith.addf %14, %15 : vector<64x16xf32>
    %c0_9 = arith.constant 0 : index
    %c0_10 = arith.constant 0 : index
    %c0_11 = arith.constant 0 : index
    %17 = vector.load %arg6[%c0_9, %c0_10, %c0_11] : memref<1x64x16xf32, #tpu.memory_space<vmem>>, vector<1x64x16xf32>
    %18 = vector.shape_cast %17 : vector<1x64x16xf32> to vector<64x16xf32>
    %19 = vector.shape_cast %16 : vector<64x16xf32> to vector<1x64x16xf32>
    tpu.vector_store %arg6[%c0_9, %c0_10, %c0_11], %19 {strides = array<i32>} : memref<1x64x16xf32, #tpu.memory_space<vmem>>, vector<1x64x16xf32>,
    return
  }
  func.func @transform_0(%arg0: i32, %arg1: i32) -> (i32, i32, i32) {
    %c0_i32 = arith.constant 0 : i32
    %c0_i32_0 = arith.constant 0 : i32
    %c0_i32_1 = arith.constant 0 : i32
    return %arg0, %c0_i32, %c0_i32_0 : i32, i32, i32
  }
  func.func @transform_1(%arg0: i32, %arg1: i32) -> (i32, i32) {
    %c0_i32 = arith.constant 0 : i32
    %c0_i32_0 = arith.constant 0 : i32
    %c0_i32_1 = arith.constant 0 : i32
    return %c0_i32, %c0_i32_0 : i32, i32
  }
  func.func @transform_2(%arg0: i32, %arg1: i32) -> (i32, i32) {
    %c0_i32 = arith.constant 0 : i32
    %c0_i32_0 = arith.constant 0 : i32
    %c0_i32_1 = arith.constant 0 : i32
    return %c0_i32, %c0_i32_0 : i32, i32
  }
  func.func @transform_3(%arg0: i32, %arg1: i32) -> (i32, i32, i32) {
    %c0_i32 = arith.constant 0 : i32
    %c0_i32_0 = arith.constant 0 : i32
    return %arg0, %c0_i32, %arg1 : i32, i32, i32
  }
  func.func @transform_4(%arg0: i32, %arg1: i32) -> (i32, i32, i32) {
    %c0_i32 = arith.constant 0 : i32
    %c0_i32_0 = arith.constant 0 : i32
    return %arg0, %c0_i32, %arg1 : i32, i32, i32
  }
}

</mosaic_0001>

<bundles_post_ra>
// kernel: tpu_custom_call.1
= control target key start
LH: loop header
LB: loop body
LE: loop exit
PB: predicated region body
PF: predicated region fallthrough
CT: control target
= control target key end

     0   :  { %s657_s15 = smov 0   ;;  %s659_s16 = smov 0   ;;  %s837_s0 = inlined_call_operand.vmem [shape: f32[2,1,4], index: 0, kind: input, shape index: {}]   ;;  %s838_s1 = inlined_call_operand.vmem [shape: f32[128,4], index: 1, kind: input, shape index: {}]   ;;  %s839_s2 = inlined_call_operand.vmem [shape: f32[128,1], index: 2, kind: input, shape index: {}]   ;;  %s840_s3 = inlined_call_operand.vmem [shape: f32[2,64,16], index: 3, kind: input, shape index: {}]   ;;  %s841_s4 = inlined_call_operand.vmem [shape: f32[2,64,16], index: 4, kind: output, shape index: {}]  }
   0x1   :  { %s661_s17 = smov 0  }
   0x2 LB: > { %s26_s18 = sadd.s32 1, %s625_s16  ;;  %p569_p0 = scmp.ge.s32.totalorder %s629_s17, 1  ;;  %s629_s17 = sphi %s661_s17, %s14_s17   ;;  %s625_s16 = sphi %s659_s16, %s843_s16   ;;  %s621_s15 = sphi %s657_s15, %s842_s15  }
   0x3   : > { %p28_p1 = scmp.ge.s32.totalorder %s26_s18, 2  ;;  %p189_p2 = scmp.lt.s32.totalorder %s629_s17, 3 }
   0x5   : > { %s845_s18 = smov (%p28_p1, %s26_s18), 0  ;;  %p190_p3 = pnand %p569_p0, %p189_p2 }
   0x6   : > { %p224_p4 = scmp.lt.s32.totalorder (!%p190_p3), %s621_s15, 1 }
   0x7   : > { %193 = sbr.rel (%p190_p3) target bundleno = 295 (0x127), region = 36 }
   0xc   : > { %s847_s15 = smov (!%p224_p4, %s621_s15), 1  ;;  %v243_v0 = vld [vmem:[%s838_s1] sm:$0xff]  ;;  %v245_v2 = vld [vmem:[%s838_s1 + $0x10] sm:$0xff]  ;;  %vm279_vm0 = vcmask 31744   ;;  %v244_v7 = vld [vmem:[%s838_s1 + $0x8] sm:$0xff]  ;;  %v631_v49 = vmov 0  }
   0xd   : > { %s226_s21 = scalar_lea.vmem %s837_s0, %s847_s15  ;;  %v247_v1 = vld [vmem:[%s838_s1 + $0x20] sm:$0xff]  ;;  %v248_v8 = vld [vmem:[%s838_s1 + $0x28] sm:$0xff]  ;;  %v246_v12 = vld [vmem:[%s838_s1 + $0x18] sm:$0xff]  ;;  %603 = vset.pattern.permute.xlu1 %v631_v49  ;;  %604 = vset.pattern.permute.xlu2 %v631_v49  ;;  %s576_s20 = sshll.u32 %s847_s15, 6  ;;  %vm464_vm1 = vcmask 130048  }
   0xe   : > { %v606_v3 = vld [vmem:[%s226_s21] ss:$0 sm:$0xff]  ;;  %v249_v19 = vld [vmem:[%s838_s1 + $0x30] sm:$0xff]  ;;  %v250_v21 = vld [vmem:[%s838_s1 + $0x38] sm:$0xff]  ;;  %605 = vset.pattern.permute.xlu0 %v631_v49  ;;  %s797_s23 = scalar_lea.vmem %s840_s3, %s576_s20  ;;  %s803_s26 = scalar_lea.vmem %s841_s4, %s576_s20 }
   0xf   : > { %v263_v4 = vmul.f32 %v606_v3, %v243_v0  ;;  %v267_v5 = vmul.f32 %v606_v3, %v247_v1  ;;  %v265_v6 = vmul.f32 %v606_v3, %v245_v2  ;;  %v264_v13 = vmul.f32 %v606_v3, %v244_v7  ;;  %v251_v20 = vld [vmem:[%s838_s1 + $0x40] sm:$0xff]  ;;  %v252_v27 = vld [vmem:[%s838_s1 + $0x48] sm:$0xff]  ;;  %v254_v28 = vld [vmem:[%s838_s1 + $0x58] sm:$0xff] }
  0x10   : > { %v268_v14 = vmul.f32 %v606_v3, %v248_v8  ;;  %v266_v15 = vmul.f32 %v606_v3, %v246_v12  ;;  %v269_v22 = vmul.f32 %v606_v3, %v249_v19  ;;  %v271_v23 = vmul.f32 %v606_v3, %v251_v20  ;;  %v253_v30 = vld [vmem:[%s838_s1 + $0x50] sm:$0xff]  ;;  %v255_v36 = vld [vmem:[%s838_s1 + $0x60] sm:$0xff]  ;;  %v256_v39 = vld [vmem:[%s838_s1 + $0x68] sm:$0xff] }
  0x11   : > { %v280_v9 = vsel %vm279_vm0, %v263_v4, 0.0  ;;  %v292_v10 = vsel %vm279_vm0, %v267_v5, 0.0  ;;  %v286_v11 = vsel %vm279_vm0, %v265_v6, 0.0  ;;  %v283_v16 = vsel %vm279_vm0, %v264_v13, 0.0  ;;  %v257_v37 = vld [vmem:[%s838_s1 + $0x70] sm:$0xff]  ;;  %v258_v45 = vld [vmem:[%s838_s1 + $0x78] sm:$0xff] }
  0x12   : > { %281 = vadd.xlane.f32.xlu0 %v280_v9  ;;  %293 = vadd.xlane.f32.xlu2 %v292_v10  ;;  %v295_v17 = vsel %vm279_vm0, %v268_v14, 0.0  ;;  %v289_v18 = vsel %vm279_vm0, %v266_v15, 0.0  ;;  %v270_v24 = vmul.f32 %v606_v3, %v250_v21  ;;  %v298_v25 = vsel %vm279_vm0, %v269_v22, 0.0  ;;  %v328_v50 = vld [vmem:[%s839_s2] sm:$0xff]  ;;  %v330_v51 = vld [vmem:[%s839_s2 + $0x10] sm:$0xff]  ;;  %v329_v58 = vld [vmem:[%s839_s2 + $0x8] sm:$0xff] }
  0x13   : > { %287 = vadd.xlane.f32.xlu1 %v286_v11  ;;  %v304_v26 = vsel %vm279_vm0, %v271_v23, 0.0  ;;  %v272_v31 = vmul.f32 %v606_v3, %v252_v27  ;;  %v274_v32 = vmul.f32 %v606_v3, %v254_v28  ;;  %v273_v33 = vmul.f32 %v606_v3, %v253_v30  ;;  %v332_v57 = vld [vmem:[%s839_s2 + $0x20] sm:$0xff]  ;;  %v331_v63 = vld [vmem:[%s839_s2 + $0x18] sm:$0xff]  ;;  %v334_v1 = vld [vmem:[%s839_s2 + $0x30] sm:$0xff] }
  0x14   : > { %v301_v29 = vsel %vm279_vm0, %v270_v24, 0.0  ;;  %v275_v40 = vmul.f32 %v606_v3, %v255_v36  ;;  %v277_v41 = vmul.f32 %v606_v3, %v257_v37  ;;  %v276_v42 = vmul.f32 %v606_v3, %v256_v39  ;;  %v336_v6 = vld [vmem:[%s839_s2 + $0x40] sm:$0xff]  ;;  %v333_v7 = vld [vmem:[%s839_s2 + $0x28] sm:$0xff]  ;;  %v339_v15 = vld [vmem:[%s839_s2 + $0x58] sm:$0xff] }
  0x15   : > { %v307_v34 = vsel %vm279_vm0, %v272_v31, 0.0  ;;  %v313_v35 = vsel %vm279_vm0, %v274_v32, 0.0  ;;  %v310_v38 = vsel %vm279_vm0, %v273_v33, 0.0  ;;  %v278_v47 = vmul.f32 %v606_v3, %v258_v45  ;;  %v337_v8 = vld [vmem:[%s839_s2 + $0x48] sm:$0xff]  ;;  %v342_v23 = vld [vmem:[%s839_s2 + $0x70] sm:$0xff] }
  0x16   : > { %v316_v43 = vsel %vm279_vm0, %v275_v40, 0.0  ;;  %v322_v44 = vsel %vm279_vm0, %v277_v41, 0.0  ;;  %v319_v46 = vsel %vm279_vm0, %v276_v42, 0.0  ;;  %v341_v31 = vld [vmem:[%s839_s2 + $0x68] sm:$0xff]  ;;  %v362_v40 = vld [vmem:[%s797_s23 + $0x10] sm:$0xff] }
  0x17   : > { %v325_v48 = vsel %vm279_vm0, %v278_v47, 0.0  ;;  %v365_v47 = vld [vmem:[%s797_s23 + $0x28] sm:$0xff] }
  0x1a   : > { %284 = vadd.xlane.f32.xlu0 %v283_v16  ;;  %296 = vadd.xlane.f32.xlu2 %v295_v17  ;;  %v335_v16 = vld [vmem:[%s839_s2 + $0x38] sm:$0xff]  ;;  %v340_v17 = vld [vmem:[%s839_s2 + $0x60] sm:$0xff] }
  0x1b   : > { %290 = vadd.xlane.f32.xlu1 %v289_v18 }
  0x22   : > { %299 = vadd.xlane.f32.xlu0 %v298_v25  ;;  %305 = vadd.xlane.f32.xlu2 %v304_v26  ;;  %v338_v25 = vld [vmem:[%s839_s2 + $0x50] sm:$0xff]  ;;  %v343_v26 = vld [vmem:[%s839_s2 + $0x78] sm:$0xff] }
  0x23   : > { %302 = vadd.xlane.f32.xlu1 %v301_v29 }
  0x2a   : > { %308 = vadd.xlane.f32.xlu0 %v307_v34  ;;  %314 = vadd.xlane.f32.xlu2 %v313_v35 }
  0x2b   : > { %311 = vadd.xlane.f32.xlu1 %v310_v38 }
  0x32   : > { %317 = vadd.xlane.f32.xlu0 %v316_v43  ;;  %323 = vadd.xlane.f32.xlu2 %v322_v44 }
  0x33   : > { %320 = vadd.xlane.f32.xlu1 %v319_v46  ;;  %v360_v46 = vld [vmem:[%s797_s23] sm:$0xff] }
  0x3a   : > { %326 = vadd.xlane.f32.xlu0 %v325_v48  ;;  %v361_v48 = vld [vmem:[%s797_s23 + $0x8] sm:$0xff] }
  0x85   : > { %v282_v52 = vpop.xlane.xlu0 %281  ;;  %v294_v53 = vpop.xlane.xlu2 %293 }
  0x86   : > { %v344_v54 = vadd.f32 %v328_v50, %v282_v52  ;;  %v288_v55 = vpop.xlane.xlu1 %287  ;;  %v348_v59 = vadd.f32 %v332_v57, %v294_v53 }
  0x87   : > { %v346_v56 = vadd.f32 %v330_v51, %v288_v55 }
  0x88   : > { %370 = vperm.xlu1 %603, %v344_v54  }
  0x89   : > { %380 = vperm.xlu0 %605, %v346_v56  }
  0x8d   : > { %v285_v60 = vpop.xlane.xlu0 %284  ;;  %v297_v61 = vpop.xlane.xlu2 %296 }
  0x8e   : > { %v345_v62 = vadd.f32 %v329_v58, %v285_v60  ;;  %v291_v0 = vpop.xlane.xlu1 %290  ;;  %v349_v12 = vadd.f32 %v333_v7, %v297_v61  ;;  %v363_v58 = vld [vmem:[%s797_s23 + $0x18] sm:$0xff] }
  0x8f   : > { %v347_v2 = vadd.f32 %v331_v63, %v291_v0 }
  0x90   : > { %390 = vperm.xlu1 %603, %v348_v59   ;;  %375 = vperm.xlu2 %604, %v345_v62   ;;  %v364_v59 = vld [vmem:[%s797_s23 + $0x20] sm:$0xff] }
  0x95   : > { %v300_v3 = vpop.xlane.xlu0 %299  ;;  %v306_v4 = vpop.xlane.xlu2 %305 }
  0x96   : > { %v350_v5 = vadd.f32 %v334_v1, %v300_v3  ;;  %v352_v9 = vadd.f32 %v336_v6, %v306_v4  ;;  %v303_v11 = vpop.xlane.xlu1 %302  ;;  %v367_v3 = vld [vmem:[%s797_s23 + $0x38] sm:$0xff] }
  0x97   : > { %v351_v19 = vadd.f32 %v335_v16, %v303_v11 }
  0x98   : > { %385 = vperm.xlu2 %604, %v347_v2   ;;  %400 = vperm.xlu1 %603, %v350_v5   ;;  %v366_v2 = vld [vmem:[%s797_s23 + $0x30] sm:$0xff] }
  0x9d   : > { %v309_v10 = vpop.xlane.xlu0 %308  ;;  %v315_v14 = vpop.xlane.xlu2 %314 }
  0x9e   : > { %v353_v13 = vadd.f32 %v337_v8, %v309_v10  ;;  %v355_v18 = vadd.f32 %v339_v15, %v315_v14  ;;  %v312_v22 = vpop.xlane.xlu1 %311 }
  0x9f   : > { %v354_v28 = vadd.f32 %v338_v25, %v312_v22 }
  0xa0   : > { %395 = vperm.xlu2 %604, %v349_v12   ;;  %418 = vperm.xlu1 %603, %v352_v9  }
  0xa1   : > { %423 = vperm.xlu0 %605, %v353_v13  }
  0xa5   : > { %v318_v20 = vpop.xlane.xlu0 %317  ;;  %v324_v24 = vpop.xlane.xlu2 %323 }
  0xa6   : > { %v356_v21 = vadd.f32 %v340_v17, %v318_v20  ;;  %v358_v27 = vadd.f32 %v342_v23, %v324_v24  ;;  %v321_v32 = vpop.xlane.xlu1 %320 }
  0xa7   : > { %v357_v33 = vadd.f32 %v341_v31, %v321_v32 }
  0xa8   : > { %405 = vperm.xlu2 %604, %v351_v19   ;;  %433 = vperm.xlu1 %603, %v355_v18  }
  0xa9   : > { %438 = vperm.xlu0 %605, %v356_v21  }
  0xad   : > { %v327_v29 = vpop.xlane.xlu0 %326 }
  0xae   : > { %v359_v30 = vadd.f32 %v343_v26, %v327_v29 }
  0xb0   : > { %428 = vperm.xlu2 %604, %v354_v28   ;;  %448 = vperm.xlu1 %603, %v358_v27  }
  0xb1   : > { %453 = vperm.xlu0 %605, %v359_v30  }
  0xb8   : > { %443 = vperm.xlu2 %604, %v357_v33  }
  0xea   : > { %v376_v34 = vpop.permute.xlu2 %375 }
  0xeb   : > { %v409_v51 = vmul.f32 %v376_v34, %v361_v48 }
  0xf2   : > { %v386_v35 = vpop.permute.xlu2 %385 }
  0xf3   : > { %v411_v60 = vmul.f32 %v386_v35, %v363_v58 }
  0xfa   : > { %v371_v36 = vpop.permute.xlu1 %370  ;;  %v396_v37 = vpop.permute.xlu2 %395 }
  0xfb   : > { %v381_v41 = vpop.permute.xlu0 %380  ;;  %v408_v49 = vmul.f32 %v371_v36, %v360_v46  ;;  %v413_v50 = vmul.f32 %v396_v37, %v365_v47 }
  0xfc   : > { %v410_v42 = vmul.f32 %v381_v41, %v362_v40 }
 0x102   : > { %v391_v38 = vpop.permute.xlu1 %390  ;;  %v406_v39 = vpop.permute.xlu2 %405 }
 0x103   : > { %v412_v61 = vmul.f32 %v391_v38, %v364_v59  ;;  %v415_v5 = vmul.f32 %v406_v39, %v367_v3 }
 0x10a   : > { %v429_v43 = vpop.permute.xlu2 %428  ;;  %v401_v44 = vpop.permute.xlu1 %400 }
 0x10b   : > { %v458_v45 = vadd.f32 %v429_v43, %v410_v42  ;;  %v414_v4 = vmul.f32 %v401_v44, %v366_v2 }
 0x10d   : > { %467 = vst.msk [vmem:[%s803_s26 + $0x10] sm:$0xff] %vm464_vm1, %v458_v45 }
 0x112   : > { %v444_v52 = vpop.permute.xlu2 %443  ;;  %v419_v53 = vpop.permute.xlu1 %418 }
 0x113   : > { %v461_v54 = vadd.f32 %v444_v52, %v413_v50  ;;  %v456_v55 = vadd.f32 %v419_v53, %v408_v49  ;;  %v424_v56 = vpop.permute.xlu0 %423 }
 0x114   : > { %v457_v57 = vadd.f32 %v424_v56, %v409_v51 }
 0x115   : > { %470 = vst.msk [vmem:[%s803_s26 + $0x28] sm:$0xff] %vm464_vm1, %v461_v54 }
 0x116   : > { %465 = vst.msk [vmem:[%s803_s26] sm:$0xff] %vm464_vm1, %v456_v55 }
 0x117   : > { %466 = vst.msk [vmem:[%s803_s26 + $0x8] sm:$0xff] %vm464_vm1, %v457_v57 }
 0x11a   : > { %v434_v62 = vpop.permute.xlu1 %433 }
 0x11b   : > { %v459_v63 = vadd.f32 %v434_v62, %v411_v60  ;;  %v439_v0 = vpop.permute.xlu0 %438 }
 0x11c   : > { %v460_v1 = vadd.f32 %v439_v0, %v412_v61 }
 0x11d   : > { %468 = vst.msk [vmem:[%s803_s26 + $0x18] sm:$0xff] %vm464_vm1, %v459_v63 }
 0x11e   : > { %469 = vst.msk [vmem:[%s803_s26 + $0x20] sm:$0xff] %vm464_vm1, %v460_v1 }
 0x122   : > { %v449_v6 = vpop.permute.xlu1 %448 }
 0x123   : > { %v462_v7 = vadd.f32 %v449_v6, %v414_v4  ;;  %v454_v8 = vpop.permute.xlu0 %453 }
 0x124   : > { %v463_v9 = vadd.f32 %v454_v8, %v415_v5 }
 0x125   : > { %471 = vst.msk [vmem:[%s803_s26 + $0x30] sm:$0xff] %vm464_vm1, %v462_v7 }
 0x126   : > { %472 = vst.msk [vmem:[%s803_s26 + $0x38] sm:$0xff] %vm464_vm1, %v463_v9 }
 0x127 PF: > { %s14_s17 = sadd.s32 1, %s629_s17   ;;  %s842_s15 = smov %s625_s16 }
 0x128   : > { %p11_p5 = scmp.ge.s32.totalorder %s14_s17, 4   ;;  %s843_s16 = smov %s845_s18 }
 0x12a   :  { %13 = sbr.rel (!%p11_p5) target bundleno = 2 (0x2), region = 69 }

</bundles_post_ra>
